<compile_context>
chip_gen: v5e
topology: v5e:2x2
jax: 0.10.0
libtpu: 0.0.40
codegen_flags: <defaults>
</compile_context>

<pallas_src>
import functools
import math

import numpy as np

import jax
import jax.numpy as jnp
from jax import lax
from jax.experimental import pallas as pl
from jax.experimental.pallas import tpu as pltpu


def _layernorm(x, gamma, beta, eps=1e-5):
    mean = jnp.mean(x, axis=-1, keepdims=True)
    var = jnp.mean((x - mean) ** 2, axis=-1, keepdims=True)
    return (x - mean) * lax.rsqrt(var + eps) * gamma + beta


def transformer_encoder_kernel(num_heads, approx_recip,
                               x_ref,
                               wqkv_ref, bqkv_ref,
                               wo_ref, bo_ref,
                               g1_ref, be1_ref,
                               w1_ref, b1_ref,
                               w2_ref, b2_ref,
                               g2_ref, be2_ref,
                               out_ref,
                               ctx_ref):
    Bt, L, D = x_ref.shape
    H = num_heads
    hd = D // H
    scale = 1.0 / math.sqrt(hd)
    cdt = wqkv_ref.dtype          # MXU input dtype (bf16 or f32)
    M = Bt * L

    # (Bt, L, D) -> (M, D): fold batch into the matmul M dimension.
    x = x_ref[...].reshape(M, D).astype(jnp.float32)

    # ---- fused QKV projection: one MXU matmul with N = 3D, f32 accumulate ----
    qkv = jnp.dot(x.astype(cdt), wqkv_ref[...],
                  preferred_element_type=jnp.float32) + bqkv_ref[...]
    q = (qkv[:, :D] * scale).astype(cdt)
    k = qkv[:, D:2 * D].astype(cdt)
    v = qkv[:, 2 * D:].astype(cdt)

    # ---- scaled dot-product attention ----
    # Head outputs are stored directly into the (M, D) VMEM scratch slice,
    # so no lane concatenate is needed before the output projection.
    dn = (((1,), (1,)), ((), ()))          # contract feature dim: q @ k^T
    for b in range(Bt):
        r0 = b * L
        for h in range(H):
            c0 = h * hd
            qh = q[r0:r0 + L, c0:c0 + hd]
            kh = k[r0:r0 + L, c0:c0 + hd]
            vh = v[r0:r0 + L, c0:c0 + hd]
            s = lax.dot_general(qh, kh, dn, preferred_element_type=jnp.float32)
            s = s - jnp.max(s, axis=-1, keepdims=True)
            p = jnp.exp(s)
            denom = jnp.sum(p, axis=-1, keepdims=True)
            # EUP reciprocal instead of a VALU divide.
            a = p * pl.reciprocal(denom, approx=approx_recip)
            ctx_h = jnp.dot(a.astype(cdt), vh, preferred_element_type=jnp.float32)
            ctx_ref[pl.ds(r0, L), pl.ds(c0, hd)] = ctx_h.astype(ctx_ref.dtype)

    # ---- output projection + residual + LayerNorm 1 (f32) ----
    attn = jnp.dot(ctx_ref[...], wo_ref[...],
                   preferred_element_type=jnp.float32) + bo_ref[...]
    y = _layernorm(x + attn, g1_ref[...], be1_ref[...])

    # ---- FFN (Linear -> ReLU -> Linear) + residual + LayerNorm 2 ----
    h1 = jnp.dot(y.astype(cdt), w1_ref[...],
                 preferred_element_type=jnp.float32) + b1_ref[...]
    h1 = jnp.maximum(h1, 0.0)
    ffn = jnp.dot(h1.astype(cdt), w2_ref[...],
                  preferred_element_type=jnp.float32) + b2_ref[...]
    out = _layernorm(y + ffn, g2_ref[...], be2_ref[...])

    out_ref[...] = out.reshape(Bt, L, D).astype(out_ref.dtype)


def _pick_batch_tile(batch, seq, target_rows=256):
    """Largest batch tile whose row count Bt*L stays near `target_rows`,
    preferring >=2 grid steps (megacore) when the whole problem is small."""
    divisors = [d for d in range(1, batch + 1) if batch % d == 0]
    if batch * seq <= target_rows:
        cands = [d for d in divisors if batch // d >= 2] or divisors
        return max(cands)
    cands = [d for d in divisors if d * seq <= target_rows] or [1]
    return max(cands)


def _vmem_limit_bytes(Bt, L, D, compute_dtype):
    cb = np.dtype(compute_dtype).itemsize
    M = Bt * L
    weights = (3 * D * D + D * D + 4 * D * D + 4 * D * D) * cb   # single-buffered residents
    vectors = (3 * D + 6 * D + 8 * D) * 4                        # biases + LN params (f32)
    io_tiles = 2 * 2 * M * D * 4                                 # double-buffered x / out slabs
    scratch = M * D * cb
    work = M * 3 * D * 4 + M * 4 * D * 4 + 2 * L * L * 4 + 6 * M * D * 4
    est = weights + vectors + io_tiles + scratch + work
    # Generous headroom; capped at 64 MiB so the same setting is legal on v7x
    # (raise the cap on 128-MiB-VMEM parts if bigger tiles are ever used).
    return int(min(max(2 * est, 32 * 1024 * 1024), 64 * 1024 * 1024))


def pack_params(torch_params, compute_dtype):
    """Torch-layout params -> kernel layout: fused (D,3D) QKV weight, weights
    transposed to (in,out) and cast to the MXU dtype, 1-D vectors as f32 rows."""
    (in_proj_w, in_proj_b, wo, bo, w1, b1, w2, b2, g1, be1, g2, be2) = torch_params
    row = lambda vec: vec.reshape(1, -1).astype(jnp.float32)
    return (
        in_proj_w.T.astype(compute_dtype), row(in_proj_b),   # fused QKV
        wo.T.astype(compute_dtype), row(bo),
        row(g1), row(be1),
        w1.T.astype(compute_dtype), row(b1),
        w2.T.astype(compute_dtype), row(b2),
        row(g2), row(be2),
    )


def transformer_encoder(x, torch_params, num_heads, compute_dtype=jnp.bfloat16):
    """x: (B, L, D) f32.  torch_params: PyTorch-layout parameter tuple."""
    B, L, D = x.shape
    assert D % num_heads == 0, "attention_dim must be divisible by num_heads"
    kparams = pack_params(torch_params, compute_dtype)

    Bt = _pick_batch_tile(B, L)
    grid = (B // Bt,)
    M = Bt * L
    approx_recip = bool(np.dtype(compute_dtype) == np.dtype(jnp.bfloat16))

    kernel = functools.partial(transformer_encoder_kernel, num_heads, approx_recip)

    x_spec = pl.BlockSpec((Bt, L, D), lambda i: (i, 0, 0))
    out_spec = pl.BlockSpec((Bt, L, D), lambda i: (i, 0, 0))
    # Weights / biases / LN params: whole-array VMEM residents, outside the
    # grid pipeline -> copied in once, single-buffered.
    wspec = pl.BlockSpec(memory_space=pltpu.MemorySpace.VMEM)
    in_specs = [x_spec] + [wspec] * len(kparams)

    return pl.pallas_call(
        kernel,
        out_shape=jax.ShapeDtypeStruct((B, L, D), x.dtype),
        grid_spec=pltpu.PrefetchScalarGridSpec(
            num_scalar_prefetch=0,
            grid=grid,
            in_specs=in_specs,
            out_specs=out_spec,
            scratch_shapes=[pltpu.VMEM((M, D), compute_dtype)],
        ),
        compiler_params=pltpu.CompilerParams(
            dimension_semantics=("parallel",),
            vmem_limit_bytes=_vmem_limit_bytes(Bt, L, D, compute_dtype),
        ),
    )(x, *kparams)


def init_torch_params(key, attention_dim):
    """Deterministic parameters with the PyTorch module's native shapes."""
    D = attention_dim
    ks = jax.random.split(key, 8)
    s = 0.05
    in_proj_w = jax.random.normal(ks[0], (3 * D, D), jnp.float32) * s
    in_proj_b = jax.random.normal(ks[1], (3 * D,), jnp.float32) * s
    wo = jax.random.normal(ks[2], (D, D), jnp.float32) * s
    bo = jax.random.normal(ks[3], (D,), jnp.float32) * s
    w1 = jax.random.normal(ks[4], (4 * D, D), jnp.float32) * s
    b1 = jax.random.normal(ks[5], (4 * D,), jnp.float32) * s
    w2 = jax.random.normal(ks[6], (D, 4 * D), jnp.float32) * s
    b2 = jax.random.normal(ks[7], (D,), jnp.float32) * s
    g1, be1 = jnp.ones((D,), jnp.float32), jnp.zeros((D,), jnp.float32)
    g2, be2 = jnp.ones((D,), jnp.float32), jnp.zeros((D,), jnp.float32)
    return (in_proj_w, in_proj_b, wo, bo, w1, b1, w2, b2, g1, be1, g2, be2)


def reference_forward(x, torch_params, num_heads):
    """Pure-JAX f32 reference mirroring the PyTorch module (eval mode)."""
    (in_proj_w, in_proj_b, wo, bo, w1, b1, w2, b2, g1, be1, g2, be2) = torch_params
    B, L, D = x.shape
    hd = D // num_heads
    scale = 1.0 / math.sqrt(hd)

    def one(xb):
        qkv = xb @ in_proj_w.T + in_proj_b
        q, k, v = qkv[:, :D], qkv[:, D:2 * D], qkv[:, 2 * D:]
        q = q.reshape(L, num_heads, hd) * scale
        k = k.reshape(L, num_heads, hd)
        v = v.reshape(L, num_heads, hd)
        s = jnp.einsum('qhd,khd->hqk', q, k)
        a = jax.nn.softmax(s, axis=-1)
        ctx = jnp.einsum('hqk,khd->qhd', a, v).reshape(L, D)
        attn_out = ctx @ wo.T + bo
        y = _layernorm(xb + attn_out, g1, be1)
        h = jnp.maximum(y @ w1.T + b1, 0.0)
        ffn = h @ w2.T + b2
        return _layernorm(y + ffn, g2, be2)

    return jax.vmap(one)(x)


if __name__ == "__main__":
    B, L, D, H = 2, 8, 32, 4  # batch, seq, attention_dim, num_heads

    key = jax.random.PRNGKey(0)
    k_x, k_p = jax.random.split(key)
    x = jax.random.normal(k_x, (B, L, D), jnp.float32)
    torch_params = init_torch_params(k_p, D)
    ref = reference_forward(x, torch_params, H)

    # Strict correctness check: f32 compute path must match the reference.
    out_f32 = jax.block_until_ready(
        transformer_encoder(x, torch_params, H, compute_dtype=jnp.float32))
    assert out_f32.shape == (B, L, D)
    assert bool(jnp.all(jnp.isfinite(out_f32)))
    assert bool(jnp.allclose(out_f32, ref, atol=1e-4, rtol=1e-4)), "f32 mismatch vs reference"

    # Performance config: bf16 MXU inputs, f32 accumulation, approx reciprocal.
    out_bf16 = jax.block_until_ready(
        transformer_encoder(x, torch_params, H, compute_dtype=jnp.bfloat16))
    assert out_bf16.shape == (B, L, D)
    assert bool(jnp.all(jnp.isfinite(out_bf16)))
    assert bool(jnp.allclose(out_bf16, ref, atol=5e-2, rtol=5e-2)), "bf16 mismatch vs reference"

    print("KERNEL_OK")
</pallas_src>

<mosaic_0001>
module attributes {stable_mosaic.version = 11 : i64} {
  func.func @transformer_encoder_kernel(%arg0: i32, %arg1: memref<1x8x32xf32, #tpu.memory_space<vmem>>, %arg2: memref<32x96xf32, #tpu.memory_space<vmem>>, %arg3: memref<1x96xf32, #tpu.memory_space<vmem>>, %arg4: memref<32x32xf32, #tpu.memory_space<vmem>>, %arg5: memref<1x32xf32, #tpu.memory_space<vmem>>, %arg6: memref<1x32xf32, #tpu.memory_space<vmem>>, %arg7: memref<1x32xf32, #tpu.memory_space<vmem>>, %arg8: memref<32x128xf32, #tpu.memory_space<vmem>>, %arg9: memref<1x128xf32, #tpu.memory_space<vmem>>, %arg10: memref<128x32xf32, #tpu.memory_space<vmem>>, %arg11: memref<1x32xf32, #tpu.memory_space<vmem>>, %arg12: memref<1x32xf32, #tpu.memory_space<vmem>>, %arg13: memref<1x32xf32, #tpu.memory_space<vmem>>, %arg14: memref<1x8x32xf32, #tpu.memory_space<vmem>>, %arg15: memref<8x32xf32, #tpu.memory_space<vmem>>) attributes {dimension_semantics = [#tpu.dimension_semantics<parallel>], iteration_bounds = array<i64: 2>, scalar_prefetch = 0 : i64, scratch_operands = 1 : i64, tpu.core_type = #tpu.core_type<tc>, window_params = [{transform_indices = @transform_0, window_bounds = array<i64: 1, 8, 32>}, {pipeline_mode = #tpu.pipeline_mode<synchronous>, transform_indices = @transform_1, window_bounds = array<i64: 32, 96>}, {pipeline_mode = #tpu.pipeline_mode<synchronous>, transform_indices = @transform_2, window_bounds = array<i64: 1, 96>}, {pipeline_mode = #tpu.pipeline_mode<synchronous>, transform_indices = @transform_3, window_bounds = array<i64: 32, 32>}, {pipeline_mode = #tpu.pipeline_mode<synchronous>, transform_indices = @transform_4, window_bounds = array<i64: 1, 32>}, {pipeline_mode = #tpu.pipeline_mode<synchronous>, transform_indices = @transform_5, window_bounds = array<i64: 1, 32>}, {pipeline_mode = #tpu.pipeline_mode<synchronous>, transform_indices = @transform_6, window_bounds = array<i64: 1, 32>}, {pipeline_mode = #tpu.pipeline_mode<synchronous>, transform_indices = @transform_7, window_bounds = array<i64: 32, 128>}, {pipeline_mode = #tpu.pipeline_mode<synchronous>, transform_indices = @transform_8, window_bounds = array<i64: 1, 128>}, {pipeline_mode = #tpu.pipeline_mode<synchronous>, transform_indices = @transform_9, window_bounds = array<i64: 128, 32>}, {pipeline_mode = #tpu.pipeline_mode<synchronous>, transform_indices = @transform_10, window_bounds = array<i64: 1, 32>}, {pipeline_mode = #tpu.pipeline_mode<synchronous>, transform_indices = @transform_11, window_bounds = array<i64: 1, 32>}, {pipeline_mode = #tpu.pipeline_mode<synchronous>, transform_indices = @transform_12, window_bounds = array<i64: 1, 32>}, {transform_indices = @transform_13, window_bounds = array<i64: 1, 8, 32>}]} {
    %c0 = arith.constant 0 : index
    %c0_0 = arith.constant 0 : index
    %c0_1 = arith.constant 0 : index
    %0 = vector.load %arg1[%c0, %c0_0, %c0_1] : memref<1x8x32xf32, #tpu.memory_space<vmem>>, vector<1x8x32xf32>
    %1 = vector.shape_cast %0 : vector<1x8x32xf32> to vector<8x32xf32>
    %c0_2 = arith.constant 0 : index
    %c0_3 = arith.constant 0 : index
    %2 = vector.load %arg2[%c0_2, %c0_3] : memref<32x96xf32, #tpu.memory_space<vmem>>, vector<32x96xf32>
    %cst = arith.constant dense<0.000000e+00> : vector<8x96xf32>
    %3 = tpu.matmul %1, %2, %cst {dimension_numbers = #tpu.dot_dimension_numbers<[1], [0], [0], [1], [0, 0, 1, 1], [], []>} : vector<8x32xf32>, vector<32x96xf32>, vector<8x96xf32> -> vector<8x96xf32>
    %c0_4 = arith.constant 0 : index
    %c0_5 = arith.constant 0 : index
    %4 = vector.load %arg3[%c0_4, %c0_5] : memref<1x96xf32, #tpu.memory_space<vmem>>, vector<1x96xf32>
    %5 = vector.broadcast %4 : vector<1x96xf32> to vector<8x96xf32>
    %6 = arith.addf %3, %5 : vector<8x96xf32>
    %7 = vector.extract_strided_slice %6 {offsets = [0, 0], sizes = [8, 32], strides = [1, 1]} : vector<8x96xf32> to vector<8x32xf32>
    %cst_6 = arith.constant 0.353553385 : f32
    %8 = vector.broadcast %cst_6 : f32 to vector<8x32xf32>
    %9 = arith.mulf %7, %8 : vector<8x32xf32>
    %10 = vector.extract_strided_slice %6 {offsets = [0, 32], sizes = [8, 32], strides = [1, 1]} : vector<8x96xf32> to vector<8x32xf32>
    %11 = vector.extract_strided_slice %6 {offsets = [0, 64], sizes = [8, 32], strides = [1, 1]} : vector<8x96xf32> to vector<8x32xf32>
    %12 = vector.extract_strided_slice %9 {offsets = [0, 0], sizes = [8, 8], strides = [1, 1]} : vector<8x32xf32> to vector<8x8xf32>
    %13 = vector.extract_strided_slice %10 {offsets = [0, 0], sizes = [8, 8], strides = [1, 1]} : vector<8x32xf32> to vector<8x8xf32>
    %14 = vector.extract_strided_slice %11 {offsets = [0, 0], sizes = [8, 8], strides = [1, 1]} : vector<8x32xf32> to vector<8x8xf32>
    %cst_7 = arith.constant dense<0.000000e+00> : vector<8x8xf32>
    %15 = tpu.matmul %12, %13, %cst_7 {dimension_numbers = #tpu.dot_dimension_numbers<[1], [1], [0], [0], [0, 0, 1, 0], [], []>} : vector<8x8xf32>, vector<8x8xf32>, vector<8x8xf32> -> vector<8x8xf32>
    %cst_8 = arith.constant dense<0xFF800000> : vector<8xf32>
    %16 = vector.multi_reduction <maximumf>, %15, %cst_8 [1] : vector<8x8xf32> to vector<8xf32>
    %17 = vector.shape_cast %16 : vector<8xf32> to vector<8x1xf32>
    %18 = vector.broadcast %17 : vector<8x1xf32> to vector<8x8xf32>
    %19 = arith.subf %15, %18 : vector<8x8xf32>
    %20 = math.exp %19 : vector<8x8xf32>
    %cst_9 = arith.constant dense<0.000000e+00> : vector<8xf32>
    %21 = vector.multi_reduction <add>, %20, %cst_9 [1] : vector<8x8xf32> to vector<8xf32>
    %22 = vector.shape_cast %21 : vector<8xf32> to vector<8x1xf32>
    %23 = tpu.reciprocal %22 : vector<8x1xf32> -> vector<8x1xf32>
    %24 = vector.broadcast %23 : vector<8x1xf32> to vector<8x8xf32>
    %25 = arith.mulf %20, %24 : vector<8x8xf32>
    %cst_10 = arith.constant dense<0.000000e+00> : vector<8x8xf32>
    %26 = tpu.matmul %25, %14, %cst_10 {dimension_numbers = #tpu.dot_dimension_numbers<[1], [0], [0], [1], [0, 0, 1, 1], [], []>} : vector<8x8xf32>, vector<8x8xf32>, vector<8x8xf32> -> vector<8x8xf32>
    %c0_11 = arith.constant 0 : index
    %c0_12 = arith.constant 0 : index
    %27 = vector.load %arg15[%c0_11, %c0_12] : memref<8x32xf32, #tpu.memory_space<vmem>>, vector<8x8xf32>
    tpu.vector_store %arg15[%c0_11, %c0_12], %26 {strides = array<i32>} : memref<8x32xf32, #tpu.memory_space<vmem>>, vector<8x8xf32>,
    %28 = vector.extract_strided_slice %9 {offsets = [0, 8], sizes = [8, 8], strides = [1, 1]} : vector<8x32xf32> to vector<8x8xf32>
    %29 = vector.extract_strided_slice %10 {offsets = [0, 8], sizes = [8, 8], strides = [1, 1]} : vector<8x32xf32> to vector<8x8xf32>
    %30 = vector.extract_strided_slice %11 {offsets = [0, 8], sizes = [8, 8], strides = [1, 1]} : vector<8x32xf32> to vector<8x8xf32>
    %cst_13 = arith.constant dense<0.000000e+00> : vector<8x8xf32>
    %31 = tpu.matmul %28, %29, %cst_13 {dimension_numbers = #tpu.dot_dimension_numbers<[1], [1], [0], [0], [0, 0, 1, 0], [], []>} : vector<8x8xf32>, vector<8x8xf32>, vector<8x8xf32> -> vector<8x8xf32>
    %cst_14 = arith.constant dense<0xFF800000> : vector<8xf32>
    %32 = vector.multi_reduction <maximumf>, %31, %cst_14 [1] : vector<8x8xf32> to vector<8xf32>
    %33 = vector.shape_cast %32 : vector<8xf32> to vector<8x1xf32>
    %34 = vector.broadcast %33 : vector<8x1xf32> to vector<8x8xf32>
    %35 = arith.subf %31, %34 : vector<8x8xf32>
    %36 = math.exp %35 : vector<8x8xf32>
    %cst_15 = arith.constant dense<0.000000e+00> : vector<8xf32>
    %37 = vector.multi_reduction <add>, %36, %cst_15 [1] : vector<8x8xf32> to vector<8xf32>
    %38 = vector.shape_cast %37 : vector<8xf32> to vector<8x1xf32>
    %39 = tpu.reciprocal %38 : vector<8x1xf32> -> vector<8x1xf32>
    %40 = vector.broadcast %39 : vector<8x1xf32> to vector<8x8xf32>
    %41 = arith.mulf %36, %40 : vector<8x8xf32>
    %cst_16 = arith.constant dense<0.000000e+00> : vector<8x8xf32>
    %42 = tpu.matmul %41, %30, %cst_16 {dimension_numbers = #tpu.dot_dimension_numbers<[1], [0], [0], [1], [0, 0, 1, 1], [], []>} : vector<8x8xf32>, vector<8x8xf32>, vector<8x8xf32> -> vector<8x8xf32>
    %c0_17 = arith.constant 0 : index
    %c8 = arith.constant 8 : index
    %43 = vector.load %arg15[%c0_17, %c8] : memref<8x32xf32, #tpu.memory_space<vmem>>, vector<8x8xf32>
    tpu.vector_store %arg15[%c0_17, %c8], %42 {strides = array<i32>} : memref<8x32xf32, #tpu.memory_space<vmem>>, vector<8x8xf32>,
    %44 = vector.extract_strided_slice %9 {offsets = [0, 16], sizes = [8, 8], strides = [1, 1]} : vector<8x32xf32> to vector<8x8xf32>
    %45 = vector.extract_strided_slice %10 {offsets = [0, 16], sizes = [8, 8], strides = [1, 1]} : vector<8x32xf32> to vector<8x8xf32>
    %46 = vector.extract_strided_slice %11 {offsets = [0, 16], sizes = [8, 8], strides = [1, 1]} : vector<8x32xf32> to vector<8x8xf32>
    %cst_18 = arith.constant dense<0.000000e+00> : vector<8x8xf32>
    %47 = tpu.matmul %44, %45, %cst_18 {dimension_numbers = #tpu.dot_dimension_numbers<[1], [1], [0], [0], [0, 0, 1, 0], [], []>} : vector<8x8xf32>, vector<8x8xf32>, vector<8x8xf32> -> vector<8x8xf32>
    %cst_19 = arith.constant dense<0xFF800000> : vector<8xf32>
    %48 = vector.multi_reduction <maximumf>, %47, %cst_19 [1] : vector<8x8xf32> to vector<8xf32>
    %49 = vector.shape_cast %48 : vector<8xf32> to vector<8x1xf32>
    %50 = vector.broadcast %49 : vector<8x1xf32> to vector<8x8xf32>
    %51 = arith.subf %47, %50 : vector<8x8xf32>
    %52 = math.exp %51 : vector<8x8xf32>
    %cst_20 = arith.constant dense<0.000000e+00> : vector<8xf32>
    %53 = vector.multi_reduction <add>, %52, %cst_20 [1] : vector<8x8xf32> to vector<8xf32>
    %54 = vector.shape_cast %53 : vector<8xf32> to vector<8x1xf32>
    %55 = tpu.reciprocal %54 : vector<8x1xf32> -> vector<8x1xf32>
    %56 = vector.broadcast %55 : vector<8x1xf32> to vector<8x8xf32>
    %57 = arith.mulf %52, %56 : vector<8x8xf32>
    %cst_21 = arith.constant dense<0.000000e+00> : vector<8x8xf32>
    %58 = tpu.matmul %57, %46, %cst_21 {dimension_numbers = #tpu.dot_dimension_numbers<[1], [0], [0], [1], [0, 0, 1, 1], [], []>} : vector<8x8xf32>, vector<8x8xf32>, vector<8x8xf32> -> vector<8x8xf32>
    %c0_22 = arith.constant 0 : index
    %c16 = arith.constant 16 : index
    %59 = vector.load %arg15[%c0_22, %c16] : memref<8x32xf32, #tpu.memory_space<vmem>>, vector<8x8xf32>
    tpu.vector_store %arg15[%c0_22, %c16], %58 {strides = array<i32>} : memref<8x32xf32, #tpu.memory_space<vmem>>, vector<8x8xf32>,
    %60 = vector.extract_strided_slice %9 {offsets = [0, 24], sizes = [8, 8], strides = [1, 1]} : vector<8x32xf32> to vector<8x8xf32>
    %61 = vector.extract_strided_slice %10 {offsets = [0, 24], sizes = [8, 8], strides = [1, 1]} : vector<8x32xf32> to vector<8x8xf32>
    %62 = vector.extract_strided_slice %11 {offsets = [0, 24], sizes = [8, 8], strides = [1, 1]} : vector<8x32xf32> to vector<8x8xf32>
    %cst_23 = arith.constant dense<0.000000e+00> : vector<8x8xf32>
    %63 = tpu.matmul %60, %61, %cst_23 {dimension_numbers = #tpu.dot_dimension_numbers<[1], [1], [0], [0], [0, 0, 1, 0], [], []>} : vector<8x8xf32>, vector<8x8xf32>, vector<8x8xf32> -> vector<8x8xf32>
    %cst_24 = arith.constant dense<0xFF800000> : vector<8xf32>
    %64 = vector.multi_reduction <maximumf>, %63, %cst_24 [1] : vector<8x8xf32> to vector<8xf32>
    %65 = vector.shape_cast %64 : vector<8xf32> to vector<8x1xf32>
    %66 = vector.broadcast %65 : vector<8x1xf32> to vector<8x8xf32>
    %67 = arith.subf %63, %66 : vector<8x8xf32>
    %68 = math.exp %67 : vector<8x8xf32>
    %cst_25 = arith.constant dense<0.000000e+00> : vector<8xf32>
    %69 = vector.multi_reduction <add>, %68, %cst_25 [1] : vector<8x8xf32> to vector<8xf32>
    %70 = vector.shape_cast %69 : vector<8xf32> to vector<8x1xf32>
    %71 = tpu.reciprocal %70 : vector<8x1xf32> -> vector<8x1xf32>
    %72 = vector.broadcast %71 : vector<8x1xf32> to vector<8x8xf32>
    %73 = arith.mulf %68, %72 : vector<8x8xf32>
    %cst_26 = arith.constant dense<0.000000e+00> : vector<8x8xf32>
    %74 = tpu.matmul %73, %62, %cst_26 {dimension_numbers = #tpu.dot_dimension_numbers<[1], [0], [0], [1], [0, 0, 1, 1], [], []>} : vector<8x8xf32>, vector<8x8xf32>, vector<8x8xf32> -> vector<8x8xf32>
    %c0_27 = arith.constant 0 : index
    %c24 = arith.constant 24 : index
    %75 = vector.load %arg15[%c0_27, %c24] : memref<8x32xf32, #tpu.memory_space<vmem>>, vector<8x8xf32>
    tpu.vector_store %arg15[%c0_27, %c24], %74 {strides = array<i32>} : memref<8x32xf32, #tpu.memory_space<vmem>>, vector<8x8xf32>,
    %c0_28 = arith.constant 0 : index
    %c0_29 = arith.constant 0 : index
    %76 = vector.load %arg15[%c0_28, %c0_29] : memref<8x32xf32, #tpu.memory_space<vmem>>, vector<8x32xf32>
    %c0_30 = arith.constant 0 : index
    %c0_31 = arith.constant 0 : index
    %77 = vector.load %arg4[%c0_30, %c0_31] : memref<32x32xf32, #tpu.memory_space<vmem>>, vector<32x32xf32>
    %cst_32 = arith.constant dense<0.000000e+00> : vector<8x32xf32>
    %78 = tpu.matmul %76, %77, %cst_32 {dimension_numbers = #tpu.dot_dimension_numbers<[1], [0], [0], [1], [0, 0, 1, 1], [], []>} : vector<8x32xf32>, vector<32x32xf32>, vector<8x32xf32> -> vector<8x32xf32>
    %c0_33 = arith.constant 0 : index
    %c0_34 = arith.constant 0 : index
    %79 = vector.load %arg5[%c0_33, %c0_34] : memref<1x32xf32, #tpu.memory_space<vmem>>, vector<1x32xf32>
    %80 = vector.broadcast %79 : vector<1x32xf32> to vector<8x32xf32>
    %81 = arith.addf %78, %80 : vector<8x32xf32>
    %82 = arith.addf %1, %81 : vector<8x32xf32>
    %c0_35 = arith.constant 0 : index
    %c0_36 = arith.constant 0 : index
    %83 = vector.load %arg6[%c0_35, %c0_36] : memref<1x32xf32, #tpu.memory_space<vmem>>, vector<1x32xf32>
    %c0_37 = arith.constant 0 : index
    %c0_38 = arith.constant 0 : index
    %84 = vector.load %arg7[%c0_37, %c0_38] : memref<1x32xf32, #tpu.memory_space<vmem>>, vector<1x32xf32>
    %cst_39 = arith.constant dense<0.000000e+00> : vector<8xf32>
    %85 = vector.multi_reduction <add>, %82, %cst_39 [1] : vector<8x32xf32> to vector<8xf32>
    %86 = vector.shape_cast %85 : vector<8xf32> to vector<8x1xf32>
    %cst_40 = arith.constant 3.200000e+01 : f32
    %87 = vector.broadcast %cst_40 : f32 to vector<8x1xf32>
    %88 = arith.divf %86, %87 : vector<8x1xf32>
    %89 = vector.broadcast %88 : vector<8x1xf32> to vector<8x32xf32>
    %90 = arith.subf %82, %89 : vector<8x32xf32>
    %91 = arith.mulf %90, %90 : vector<8x32xf32>
    %cst_41 = arith.constant dense<0.000000e+00> : vector<8xf32>
    %92 = vector.multi_reduction <add>, %91, %cst_41 [1] : vector<8x32xf32> to vector<8xf32>
    %93 = vector.shape_cast %92 : vector<8xf32> to vector<8x1xf32>
    %cst_42 = arith.constant 3.200000e+01 : f32
    %94 = vector.broadcast %cst_42 : f32 to vector<8x1xf32>
    %95 = arith.divf %93, %94 : vector<8x1xf32>
    %96 = vector.broadcast %88 : vector<8x1xf32> to vector<8x32xf32>
    %97 = arith.subf %82, %96 : vector<8x32xf32>
    %cst_43 = arith.constant 9.99999974E-6 : f32
    %98 = vector.broadcast %cst_43 : f32 to vector<8x1xf32>
    %99 = arith.addf %95, %98 : vector<8x1xf32>
    %100 = math.rsqrt %99 : vector<8x1xf32>
    %101 = vector.broadcast %100 : vector<8x1xf32> to vector<8x32xf32>
    %102 = arith.mulf %97, %101 : vector<8x32xf32>
    %103 = vector.broadcast %83 : vector<1x32xf32> to vector<8x32xf32>
    %104 = arith.mulf %102, %103 : vector<8x32xf32>
    %105 = vector.broadcast %84 : vector<1x32xf32> to vector<8x32xf32>
    %106 = arith.addf %104, %105 : vector<8x32xf32>
    %c0_44 = arith.constant 0 : index
    %c0_45 = arith.constant 0 : index
    %107 = vector.load %arg8[%c0_44, %c0_45] : memref<32x128xf32, #tpu.memory_space<vmem>>, vector<32x128xf32>
    %cst_46 = arith.constant dense<0.000000e+00> : vector<8x128xf32>
    %108 = tpu.matmul %106, %107, %cst_46 {dimension_numbers = #tpu.dot_dimension_numbers<[1], [0], [0], [1], [0, 0, 1, 1], [], []>} : vector<8x32xf32>, vector<32x128xf32>, vector<8x128xf32> -> vector<8x128xf32>
    %c0_47 = arith.constant 0 : index
    %c0_48 = arith.constant 0 : index
    %109 = vector.load %arg9[%c0_47, %c0_48] : memref<1x128xf32, #tpu.memory_space<vmem>>, vector<1x128xf32>
    %110 = vector.broadcast %109 : vector<1x128xf32> to vector<8x128xf32>
    %111 = arith.addf %108, %110 : vector<8x128xf32>
    %cst_49 = arith.constant 0.000000e+00 : f32
    %112 = vector.broadcast %cst_49 : f32 to vector<8x128xf32>
    %113 = arith.maximumf %111, %112 : vector<8x128xf32>
    %c0_50 = arith.constant 0 : index
    %c0_51 = arith.constant 0 : index
    %114 = vector.load %arg10[%c0_50, %c0_51] : memref<128x32xf32, #tpu.memory_space<vmem>>, vector<128x32xf32>
    %cst_52 = arith.constant dense<0.000000e+00> : vector<8x32xf32>
    %115 = tpu.matmul %113, %114, %cst_52 {dimension_numbers = #tpu.dot_dimension_numbers<[1], [0], [0], [1], [0, 0, 1, 1], [], []>} : vector<8x128xf32>, vector<128x32xf32>, vector<8x32xf32> -> vector<8x32xf32>
    %c0_53 = arith.constant 0 : index
    %c0_54 = arith.constant 0 : index
    %116 = vector.load %arg11[%c0_53, %c0_54] : memref<1x32xf32, #tpu.memory_space<vmem>>, vector<1x32xf32>
    %117 = vector.broadcast %116 : vector<1x32xf32> to vector<8x32xf32>
    %118 = arith.addf %115, %117 : vector<8x32xf32>
    %119 = arith.addf %106, %118 : vector<8x32xf32>
    %c0_55 = arith.constant 0 : index
    %c0_56 = arith.constant 0 : index
    %120 = vector.load %arg12[%c0_55, %c0_56] : memref<1x32xf32, #tpu.memory_space<vmem>>, vector<1x32xf32>
    %c0_57 = arith.constant 0 : index
    %c0_58 = arith.constant 0 : index
    %121 = vector.load %arg13[%c0_57, %c0_58] : memref<1x32xf32, #tpu.memory_space<vmem>>, vector<1x32xf32>
    %cst_59 = arith.constant dense<0.000000e+00> : vector<8xf32>
    %122 = vector.multi_reduction <add>, %119, %cst_59 [1] : vector<8x32xf32> to vector<8xf32>
    %123 = vector.shape_cast %122 : vector<8xf32> to vector<8x1xf32>
    %cst_60 = arith.constant 3.200000e+01 : f32
    %124 = vector.broadcast %cst_60 : f32 to vector<8x1xf32>
    %125 = arith.divf %123, %124 : vector<8x1xf32>
    %126 = vector.broadcast %125 : vector<8x1xf32> to vector<8x32xf32>
    %127 = arith.subf %119, %126 : vector<8x32xf32>
    %128 = arith.mulf %127, %127 : vector<8x32xf32>
    %cst_61 = arith.constant dense<0.000000e+00> : vector<8xf32>
    %129 = vector.multi_reduction <add>, %128, %cst_61 [1] : vector<8x32xf32> to vector<8xf32>
    %130 = vector.shape_cast %129 : vector<8xf32> to vector<8x1xf32>
    %cst_62 = arith.constant 3.200000e+01 : f32
    %131 = vector.broadcast %cst_62 : f32 to vector<8x1xf32>
    %132 = arith.divf %130, %131 : vector<8x1xf32>
    %133 = vector.broadcast %125 : vector<8x1xf32> to vector<8x32xf32>
    %134 = arith.subf %119, %133 : vector<8x32xf32>
    %cst_63 = arith.constant 9.99999974E-6 : f32
    %135 = vector.broadcast %cst_63 : f32 to vector<8x1xf32>
    %136 = arith.addf %132, %135 : vector<8x1xf32>
    %137 = math.rsqrt %136 : vector<8x1xf32>
    %138 = vector.broadcast %137 : vector<8x1xf32> to vector<8x32xf32>
    %139 = arith.mulf %134, %138 : vector<8x32xf32>
    %140 = vector.broadcast %120 : vector<1x32xf32> to vector<8x32xf32>
    %141 = arith.mulf %139, %140 : vector<8x32xf32>
    %142 = vector.broadcast %121 : vector<1x32xf32> to vector<8x32xf32>
    %143 = arith.addf %141, %142 : vector<8x32xf32>
    %144 = vector.shape_cast %143 : vector<8x32xf32> to vector<1x8x32xf32>
    %c0_64 = arith.constant 0 : index
    %c0_65 = arith.constant 0 : index
    %c0_66 = arith.constant 0 : index
    %145 = vector.load %arg14[%c0_64, %c0_65, %c0_66] : memref<1x8x32xf32, #tpu.memory_space<vmem>>, vector<1x8x32xf32>
    tpu.vector_store %arg14[%c0_64, %c0_65, %c0_66], %144 {strides = array<i32>} : memref<1x8x32xf32, #tpu.memory_space<vmem>>, vector<1x8x32xf32>,
    return
  }
  func.func @transform_0(%arg0: i32) -> (i32, i32, i32) {
    %c0_i32 = arith.constant 0 : i32
    %c0_i32_0 = arith.constant 0 : i32
    %c0_i32_1 = arith.constant 0 : i32
    return %arg0, %c0_i32, %c0_i32_0 : i32, i32, i32
  }
  func.func @transform_1(%arg0: i32) -> (i32, i32) {
    %c0_i32 = arith.constant 0 : i32
    %c0_i32_0 = arith.constant 0 : i32
    %c0_i32_1 = arith.constant 0 : i32
    return %c0_i32, %c0_i32_0 : i32, i32
  }
  func.func @transform_2(%arg0: i32) -> (i32, i32) {
    %c0_i32 = arith.constant 0 : i32
    %c0_i32_0 = arith.constant 0 : i32
    %c0_i32_1 = arith.constant 0 : i32
    return %c0_i32, %c0_i32_0 : i32, i32
  }
  func.func @transform_3(%arg0: i32) -> (i32, i32) {
    %c0_i32 = arith.constant 0 : i32
    %c0_i32_0 = arith.constant 0 : i32
    %c0_i32_1 = arith.constant 0 : i32
    return %c0_i32, %c0_i32_0 : i32, i32
  }
  func.func @transform_4(%arg0: i32) -> (i32, i32) {
    %c0_i32 = arith.constant 0 : i32
    %c0_i32_0 = arith.constant 0 : i32
    %c0_i32_1 = arith.constant 0 : i32
    return %c0_i32, %c0_i32_0 : i32, i32
  }
  func.func @transform_5(%arg0: i32) -> (i32, i32) {
    %c0_i32 = arith.constant 0 : i32
    %c0_i32_0 = arith.constant 0 : i32
    %c0_i32_1 = arith.constant 0 : i32
    return %c0_i32, %c0_i32_0 : i32, i32
  }
  func.func @transform_6(%arg0: i32) -> (i32, i32) {
    %c0_i32 = arith.constant 0 : i32
    %c0_i32_0 = arith.constant 0 : i32
    %c0_i32_1 = arith.constant 0 : i32
    return %c0_i32, %c0_i32_0 : i32, i32
  }
  func.func @transform_7(%arg0: i32) -> (i32, i32) {
    %c0_i32 = arith.constant 0 : i32
    %c0_i32_0 = arith.constant 0 : i32
    %c0_i32_1 = arith.constant 0 : i32
    return %c0_i32, %c0_i32_0 : i32, i32
  }
  func.func @transform_8(%arg0: i32) -> (i32, i32) {
    %c0_i32 = arith.constant 0 : i32
    %c0_i32_0 = arith.constant 0 : i32
    %c0_i32_1 = arith.constant 0 : i32
    return %c0_i32, %c0_i32_0 : i32, i32
  }
  func.func @transform_9(%arg0: i32) -> (i32, i32) {
    %c0_i32 = arith.constant 0 : i32
    %c0_i32_0 = arith.constant 0 : i32
    %c0_i32_1 = arith.constant 0 : i32
    return %c0_i32, %c0_i32_0 : i32, i32
  }
  func.func @transform_10(%arg0: i32) -> (i32, i32) {
    %c0_i32 = arith.constant 0 : i32
    %c0_i32_0 = arith.constant 0 : i32
    %c0_i32_1 = arith.constant 0 : i32
    return %c0_i32, %c0_i32_0 : i32, i32
  }
  func.func @transform_11(%arg0: i32) -> (i32, i32) {
    %c0_i32 = arith.constant 0 : i32
    %c0_i32_0 = arith.constant 0 : i32
    %c0_i32_1 = arith.constant 0 : i32
    return %c0_i32, %c0_i32_0 : i32, i32
  }
  func.func @transform_12(%arg0: i32) -> (i32, i32) {
    %c0_i32 = arith.constant 0 : i32
    %c0_i32_0 = arith.constant 0 : i32
    %c0_i32_1 = arith.constant 0 : i32
    return %c0_i32, %c0_i32_0 : i32, i32
  }
  func.func @transform_13(%arg0: i32) -> (i32, i32, i32) {
    %c0_i32 = arith.constant 0 : i32
    %c0_i32_0 = arith.constant 0 : i32
    %c0_i32_1 = arith.constant 0 : i32
    return %arg0, %c0_i32, %c0_i32_0 : i32, i32, i32
  }
}

</mosaic_0001>

<bundles_post_ra>
// kernel: tpu_custom_call.1
= control target key start
LH: loop header
LB: loop body
LE: loop exit
PB: predicated region body
PF: predicated region fallthrough
CT: control target
= control target key end

     0   :  { %s1575_s0 = inlined_call_operand.vmem [shape: f32[2,8,32], index: 0, kind: input, shape index: {}]   ;;  %s1576_s1 = inlined_call_operand.vmem [shape: f32[32,96], index: 1, kind: input, shape index: {}]   ;;  %s1577_s2 = inlined_call_operand.vmem [shape: f32[1,96], index: 2, kind: input, shape index: {}]   ;;  %s1578_s3 = inlined_call_operand.vmem [shape: f32[32,32], index: 3, kind: input, shape index: {}]   ;;  %s1579_s4 = inlined_call_operand.vmem [shape: f32[1,32], index: 4, kind: input, shape index: {}]   ;;  %s1580_s5 = inlined_call_operand.vmem [shape: f32[1,32], index: 5, kind: input, shape index: {}]   ;;  %s1581_s6 = inlined_call_operand.vmem [shape: f32[1,32], index: 6, kind: input, shape index: {}]   ;;  %s1582_s7 = inlined_call_operand.vmem [shape: f32[32,128], index: 7, kind: input, shape index: {}]   ;;  %s1583_s8 = inlined_call_operand.vmem [shape: f32[1,128], index: 8, kind: input, shape index: {}]   ;;  %s1584_s9 = inlined_call_operand.vmem [shape: f32[128,32], index: 9, kind: input, shape index: {}]   ;;  %s1585_s10 = inlined_call_operand.vmem [shape: f32[1,32], index: 10, kind: input, shape index: {}]   ;;  %s1586_s11 = inlined_call_operand.vmem [shape: f32[1,32], index: 11, kind: input, shape index: {}]   ;;  %s1587_s12 = inlined_call_operand.vmem [shape: f32[1,32], index: 12, kind: input, shape index: {}]   ;;  %s1588_s13 = inlined_call_operand.hbm [shape: f32[2,8,32], index: 13, kind: output, shape index: {}]  }
   0x1   :  { %1592 = sst [smem:[#allocation9_spill]] %s1575_s0 }
   0x2   :  { %18 = vsyncpa [#allocation4], 0 }
   0x3   :  { %20 = vsyncpa [#allocation4 + $0x1], 0  ;;  %s1313_s25 = smov 0   ;;  %s1315_s26 = smov 0  }
   0x4   :  { %s1317_s27 = smov 0   ;;  %s1319_s28 = smov 0  }
   0x5 LB: > { %1593 = sst [smem:[#allocation6_spill]] %s1222_s27  ;;  %s1334_s29 = sadd.s32 4294967295, %s1226_s28   ;;  %s1226_s28 = sphi %s1319_s28, %s1599_s28   ;;  %s1222_s27 = sphi %s1317_s27, %s1601_s27   ;;  %s1218_s26 = sphi %s1315_s26, %s1603_s26   ;;  %s1214_s25 = sphi %s1313_s25, %s1602_s25  }
   0x6   : > { %s1055_s30 = sadd.s32 4294967294, %s1226_s28   ;;  %s1338_s14 = sadd.s32 1, %s1226_s28  }
   0x7   : > { %1594 = sst [smem:[#allocation7_spill]] %s1338_s14  ;;  %s311_s15 = sadd.s32 1, %s1222_s27 }
   0x8   : > { %s308_s16 = ssub.s32 %s1226_s28, %s1338_s14  ;;  %p321_p0 = scmp.ne.s32.totalorder %s1222_s27, %s1218_s26 }
   0x9   : > { %p309_p1 = scmp.eq.s32.totalorder %s308_s16, 0  ;;  %p322_p2 = scmp.eq.s32.totalorder %s1334_s29, 1 }
   0xa   : > { %p327_p3 = scmp.ne.s32.totalorder %s1218_s26, %s1214_s25  ;;  %p328_p4 = scmp.eq.s32.totalorder %s1055_s30, 1 }
   0xb   : > { %s1349_s17 = scalar_select %p309_p1, %s1222_s27, %s311_s15  }
   0xc   : > { %p1351_p5 = por %p322_p2, %p321_p0  ;;  %p1355_p6 = por %p328_p4, %p327_p3 }
   0xd   : > { %1595 = sst [smem:[#allocation8_spill]] %s1349_s17  ;;  %p1058_p7 = scmp.ge.s32.totalorder %s1226_s28, 1 }
   0xe   : > { %p389_p8 = scmp.lt.s32.totalorder %s1226_s28, 3 }
  0x10   : > { %p390_p9 = pnand %p1058_p7, %p389_p8 }
  0x11   : > { %p432_p10 = scmp.lt.s32.totalorder (!%p390_p9), %s1334_s29, 1  ;;  %s1598_s0 = sld [smem:[#allocation9_spill]] (!%p390_p9) }
  0x12   : > { %393 = sbr.rel (%p390_p9) target bundleno = 1892 (0x764), region = 72  ;;  %s1228_s17 = smov (!%p390_p9), 96  }
  0x13   : > { %s1229_s27 = smov (!%p390_p9), 112   ;;  %s1231_s24 = smov (!%p390_p9), 88  }
  0x14   : > { %s1232_s30 = smov (!%p390_p9), 72   ;;  %s1234_s16 = smov (!%p390_p9), 104  }
  0x15   : > { %s1236_s21 = smov (!%p390_p9), 40   ;;  %s1237_s22 = smov (!%p390_p9), 64  }
  0x16   : > { %s1238_s23 = smov (!%p390_p9), 48  }
  0x17   : > { %v440_v0 = vld [vmem:[%s1576_s1 + $0x18] sm:$0xff]  ;;  %v439_v1 = vld [vmem:[%s1576_s1 + $0x10] sm:$0xff]  ;;  %v438_v2 = vld [vmem:[%s1576_s1 + $0x8] sm:$0xff]  ;;  %s433_s15 = scalar_select %p432_p10, %s1334_s29, 1  ;;  %vm445_vm0 = vcmask 261120   ;;  %vm473_vm1 = vcmask 64512  }
  0x18   : > { %461 = vmatpush.msra.mxu2 %v440_v0  ;;  %v437_v3 = vld [vmem:[%s1576_s1] sm:$0xff] }
  0x19   : > { %s1060_s20 = sshll.u32 %s433_s15, 3  ;;  %v1134_v5 = vld [vmem:[%s1577_s2] ss:$0 sm:$0xff]  ;;  %s1233_s15 = smov 80  }
  0x1a   : > { %462 = vmatpush.msra.mxu2 %v439_v1  ;;  %s435_s14 = scalar_lea.vmem %s1598_s0, %s1060_s20  ;;  %s1235_s20 = smov 56  }
  0x1b   : > { %v1378_v4 = vld [vmem:[%s435_s14] sm:$0xff]  ;;  %s1230_s14 = smov 120  }
  0x1c   : > { %463 = vmatpush.msra.mxu2 %v438_v2 }
  0x1e   : > { %464 = vmatpush.msra.mxu2 %v437_v3 }
  0x1f   : > { %1061 = vmatmul.msk.f32.vlgmr.msra.gmra.mxu2 %vm445_vm0, %v1378_v4 }
  0xa2   : > { %v466_v6 = vpop.f32.mrf.mxu2 }
  0xa3   : > { %v1385_v7 = vadd.f32 %v1134_v5, %v466_v6 }
  0xa5   : > { %471 = vrot.lane.b32.xlu0 %v1385_v7, %s1228_s17  ;;  %v469_v8 = vmul.f32 0.35355338, %v1385_v7  ;;  %s1239_s17 = smov 8  }
  0xa7   : > { %634 = vrot.lane.b32.xlu2 %v469_v8, %s1229_s27  ;;  %550 = vrot.lane.b32.xlu1 %v469_v8, %s1230_s14  ;;  %s1240_s27 = smov 24   ;;  %s1241_s14 = smov 16  }
  0xad   : > { %552 = vrot.lane.b32.xlu0 %v1385_v7, %s1231_s24 }
  0xaf   : > { %720 = vrot.lane.b32.xlu2 %v1385_v7, %s1232_s30  ;;  %636 = vrot.lane.b32.xlu1 %v1385_v7, %s1233_s15 }
  0xb5   : > { %718 = vrot.lane.b32.xlu0 %v469_v8, %s1234_s16  ;;  %s429_s16 = sand.u32 1, %s1218_s26  }
 0x101   : > { %v635_v10 = vpop.permute.xlu2 %634 }
 0x109   : > { %v721_v14 = vpop.permute.xlu2 %720 }
 0x117   : > { %v472_v9 = vpop.permute.xlu0 %471 }
 0x118   : > { %1062 = vmatpush.xpose.msk.msra.mxu1 %vm473_vm1, %v472_v9 }
 0x119   : > { %v551_v11 = vpop.permute.xlu1 %550 }
 0x11b   : > { %1063 = vmatmul.msk.f32.vlgmr.msra.gmra.mxu1 %vm473_vm1, %v469_v8 }
 0x11f   : > { %v553_v12 = vpop.permute.xlu0 %552 }
 0x120   : > { %1065 = vmatpush.xpose.msk.msra.mxu3 %vm473_vm1, %v553_v12 }
 0x121   : > { %v637_v13 = vpop.permute.xlu1 %636 }
 0x122   : > { %1068 = vmatpush.xpose.msk.msrb.mxu1 %vm473_vm1, %v637_v13 }
 0x123   : > { %1066 = vmatmul.msk.f32.vlgmr.msra.gmra.mxu3 %vm473_vm1, %v551_v11 }
 0x125   : > { %1069 = vmatmul.msk.f32.vlgmr.msrb.gmra.mxu1 %vm473_vm1, %v635_v10 }
 0x126   : > { %1071 = vmatpush.xpose.msk.msra.mxu1 %vm473_vm1, %v721_v14 }
 0x127   : > { %v719_v15 = vpop.permute.xlu0 %718 }
 0x12d   : > { %1072 = vmatmul.msk.f32.vlgmr.msra.gmra.mxu1 %vm473_vm1, %v719_v15 }
 0x198   : > { %v496_v16 = vpop.f32.mrf.mxu1 }
 0x199   : > { %v499_v17 = vsel %vm473_vm1, %v496_v16, -inf }
 0x19a   : > { %500 = vmax.xlane.f32.xlu1 %v499_v17 }
 0x1a2   : > { %v659_v18 = vpop.f32.mrf.mxu1 }
 0x1a3   : > { %v662_v19 = vsel %vm473_vm1, %v659_v18, -inf }
 0x1a4   : > { %663 = vmax.xlane.f32.xlu0 %v662_v19 }
 0x1a6   : > { %v575_v20 = vpop.f32.mrf.mxu3 }
 0x1a7   : > { %v578_v21 = vsel %vm473_vm1, %v575_v20, -inf }
 0x1a8   : > { %579 = vmax.xlane.f32.xlu2 %v578_v21 }
 0x1aa   : > { %v743_v22 = vpop.f32.mrf.mxu1 }
 0x1ab   : > { %v746_v23 = vsel %vm473_vm1, %v743_v22, -inf }
 0x1b0   : > { %747 = vmax.xlane.f32.xlu2 %v746_v23 }
 0x1b8   : > { %602 = vrot.lane.b32.xlu0 %v1385_v7, %s1235_s20  ;;  %s1059_s20 = sshll.u32 %s429_s16, 3 }
 0x1b9   : > { %s431_s15 = scalar_lea.vmem [#allocation3], %s1059_s20  ;;  %s1184_s20 = scalar_lea.hbm %s1588_s13, 16 }
 0x20d   : > { %v501_v24 = vpop.xlane.xlu1 %500 }
 0x20e   : > { %v502_v25 = vsub.f32 %v496_v16, %v501_v24 }
 0x210   : > { %v503_v26 = vmul.f32 1.442695, %v502_v25 }
 0x212   : > { %1142 = vpow2.f32 %v503_v26 }
 0x217   : > { %v664_v27 = vpop.xlane.xlu0 %663 }
 0x218   : > { %v1143_v28 = vpop.eup %1142  ;;  %v665_v29 = vsub.f32 %v659_v18, %v664_v27 }
 0x219   : > { %v505_v30 = vsel %vm473_vm1, %v1143_v28, 0.0 }
 0x21a   : > { %v666_v31 = vmul.f32 1.442695, %v665_v29  ;;  %506 = vadd.xlane.f32.xlu1 %v505_v30 }
 0x21b   : > { %v580_v32 = vpop.xlane.xlu2 %579 }
 0x21c   : > { %1144 = vpow2.f32 %v666_v31  ;;  %v581_v33 = vsub.f32 %v575_v20, %v580_v32 }
 0x21e   : > { %v582_v34 = vmul.f32 1.442695, %v581_v33 }
 0x220   : > { %1146 = vpow2.f32 %v582_v34 }
 0x222   : > { %v1406_v35 = vpop.eup %1144 }
 0x223   : > { %v748_v36 = vpop.xlane.xlu2 %747  ;;  %v668_v37 = vsel %vm473_vm1, %v1406_v35, 0.0 }
 0x224   : > { %v749_v38 = vsub.f32 %v743_v22, %v748_v36  ;;  %669 = vadd.xlane.f32.xlu0 %v668_v37 }
 0x226   : > { %v1410_v39 = vpop.eup %1146  ;;  %v750_v40 = vmul.f32 1.442695, %v749_v38 }
 0x227   : > { %v584_v41 = vsel %vm473_vm1, %v1410_v39, 0.0 }
 0x228   : > { %1148 = vpow2.f32 %v750_v40  ;;  %585 = vadd.xlane.f32.xlu2 %v584_v41  ;;  %v804_v40 = vld [vmem:[%s1578_s3 + $0x8] sm:$0xff]  ;;  %v803_v41 = vld [vmem:[%s1578_s3] sm:$0xff] }
 0x22a   : > { %v603_v45 = vpop.permute.xlu0 %602 }
 0x22e   : > { %v1414_v42 = vpop.eup %1148 }
 0x22f   : > { %v752_v43 = vsel %vm473_vm1, %v1414_v42, 0.0 }
 0x230   : > { %753 = vadd.xlane.f32.xlu1 %v752_v43 }
 0x238   : > { %770 = vrot.lane.b32.xlu0 %v1385_v7, %s1236_s21  ;;  %s1077_s21 = sshll.u32 %s1334_s29, 3  ;;  %s993_s29 = sshll.u32 %s431_s15, 4  ;;  %s994_s29 = int_to_ptr.vmem [resolvable:$true] %s993_s29 }
 0x240   : > { %523 = vrot.lane.b32.xlu2 %v1385_v7, %s1237_s22  ;;  %s981_s22 = scalar_lea.sflag [#allocation4], %s429_s16 }
 0x249   : > { %686 = vrot.lane.b32.xlu1 %v1385_v7, %s1238_s23 }
 0x28d   : > { %v507_v44 = vpop.xlane.xlu1 %506 }
 0x28e   : > { %1150 = vrcp.f32 %v507_v44  ;;  %v519_v51 = vand.u32 2147483648, %v507_v44  ;;  %vm513_vm3 = vweird.f32 %v507_v44  ;;  %v517_v53 = vand.u32 2147483647, %v507_v44 }
 0x290   : > { %v520_v56 = vor.u32 1.1754944e-38, %v519_v51  ;;  %vm518_vm5 = vcmp.eq.f32.partialorder %v517_v53, 8.507059e+37 }
 0x294   : > { %v1151_v46 = vpop.eup %1150 }
 0x295   : > { %v509_v47 = vmul.f32 %v1151_v46, %v507_v44  ;;  %vm514_vm2 = vweird.f32 %v1151_v46 }
 0x296   : > { %vm515_vm4 = vmor %vm513_vm3, %vm514_vm2 }
 0x297   : > { %v510_v48 = vsub.f32 1.0, %v509_v47  ;;  %v1421_v49 = vpop.xlane.xlu0 %669 }
 0x298   : > { %1152 = vrcp.f32 %v1421_v49  ;;  %v682_v22 = vand.u32 2147483648, %v1421_v49  ;;  %vm676_vm14 = vweird.f32 %v1421_v49  ;;  %v680_v24 = vand.u32 2147483647, %v1421_v49 }
 0x299   : > { %v511_v50 = vmul.f32 %v1151_v46, %v510_v48 }
 0x29a   : > { %v683_v29 = vor.u32 1.1754944e-38, %v682_v22  ;;  %vm681_vm3 = vcmp.eq.f32.partialorder %v680_v24, 8.507059e+37  ;;  %v909_v22 = vld [vmem:[%s1584_s9 + $0x18] sm:$0xff]  ;;  %v1136_v24 = vld [vmem:[%s1580_s5] ss:$0 sm:$0xff] }
 0x29b   : > { %v512_v52 = vadd.f32 %v1151_v46, %v511_v50  ;;  %v586_v54 = vpop.xlane.xlu2 %585  ;;  %v1242_v50 = vmov 32.0  }
 0x29c   : > { %1154 = vrcp.f32 %v586_v54  ;;  %v598_v2 = vand.u32 2147483648, %v586_v54  ;;  %v596_v5 = vand.u32 2147483647, %v586_v54  ;;  %vm592_vm7 = vweird.f32 %v586_v54 }
 0x29d   : > { %v516_v55 = vsel %vm515_vm4, %v1151_v46, %v512_v52  ;;  %vm632_vm4 = vcmask 130112  }
 0x29e   : > { %v521_v57 = vsel %vm518_vm5, %v520_v56, %v516_v55  ;;  %v1153_v58 = vpop.eup %1152  ;;  %v599_v9 = vor.u32 1.1754944e-38, %v598_v2  ;;  %vm597_vm9 = vcmp.eq.f32.partialorder %v596_v5, 8.507059e+37  ;;  %vm800_vm5 = vcmask 261312   ;;  %v920_v2 = vld [vmem:[%s1584_s9 + $0x70] sm:$0xff] }
 0x29f   : > { %v522_v63 = vmul.f32 %v1143_v28, %v521_v57  ;;  %v672_v0 = vmul.f32 %v1153_v58, %v1421_v49  ;;  %vm677_vm11 = vweird.f32 %v1153_v58 }
 0x2a0   : > { %vm678_vm2 = vmor %vm676_vm14, %vm677_vm11 }
 0x2a1   : > { %v673_v6 = vsub.f32 1.0, %v672_v0  ;;  %v874_v0 = vld [vmem:[%s1582_s7] sm:$0xff] }
 0x2a2   : > { %v1155_v59 = vpop.eup %1154 }
 0x2a3   : > { %v588_v60 = vmul.f32 %v1155_v59, %v586_v54  ;;  %v524_v61 = vpop.permute.xlu2 %523  ;;  %v754_v62 = vpop.xlane.xlu1 %753  ;;  %vm593_vm6 = vweird.f32 %v1155_v59  ;;  %v674_v14 = vmul.f32 %v1153_v58, %v673_v6 }
 0x2a4   : > { %1156 = vrcp.f32 %v754_v62  ;;  %544 = vmatpush.msrb.mxu2 %v524_v61  ;;  %vm594_vm8 = vmor %vm592_vm7, %vm593_vm6  ;;  %v766_v17 = vand.u32 2147483648, %v754_v62  ;;  %v764_v19 = vand.u32 2147483647, %v754_v62  ;;  %vm760_vm12 = vweird.f32 %v754_v62  ;;  %v877_v61 = vld [vmem:[%s1582_s7 + $0x18] sm:$0xff] }
 0x2a5   : > { %v589_v1 = vsub.f32 1.0, %v588_v60  ;;  %1064 = vmatmul.msk.f32.vlgmr.msrb.gmra.mxu2 %vm473_vm1, %v522_v63  ;;  %v675_v20 = vadd.f32 %v1153_v58, %v674_v14  ;;  %1158 = vrcp.f32 %v1242_v50  ;;  %v875_v63 = vld [vmem:[%s1582_s7 + $0x8] sm:$0xff]  ;;  %v913_v14 = vld [vmem:[%s1584_s9 + $0x38] sm:$0xff] }
 0x2a6   : > { %623 = vmatpush.msra.mxu2 %v603_v45  ;;  %v767_v23 = vor.u32 1.1754944e-38, %v766_v17  ;;  %vm765_vm15 = vcmp.eq.f32.partialorder %v764_v19, 8.507059e+37  ;;  %v1135_v45 = vld [vmem:[%s1579_s4] ss:$0 sm:$0xff] }
 0x2a7   : > { %v590_v3 = vmul.f32 %v1155_v59, %v589_v1  ;;  %v679_v28 = vsel %vm678_vm2, %v1153_v58, %v675_v20  ;;  %v921_v1 = vld [vmem:[%s1584_s9 + $0x78] sm:$0xff]  ;;  %v910_v20 = vld [vmem:[%s1584_s9 + $0x20] sm:$0xff] }
 0x2a8   : > { %v684_v30 = vsel %vm681_vm3, %v683_v29, %v679_v28  ;;  %926 = vmatpush.msra.mxu0 %v921_v1 }
 0x2a9   : > { %v591_v7 = vadd.f32 %v1155_v59, %v590_v3  ;;  %v685_v32 = vmul.f32 %v1406_v35, %v684_v30  ;;  %v806_v35 = vld [vmem:[%s1578_s3 + $0x18] sm:$0xff]  ;;  %v919_v3 = vld [vmem:[%s1584_s9 + $0x68] sm:$0xff]  ;;  %v908_v30 = vld [vmem:[%s1584_s9 + $0x10] sm:$0xff] }
 0x2aa   : > { %v1157_v8 = vpop.eup %1156  ;;  %v771_v10 = vpop.permute.xlu0 %770  ;;  %826 = vmatpush.msrb.mxu1 %v806_v35  ;;  %927 = vmatpush.msra.mxu0 %v920_v2 }
 0x2ab   : > { %v595_v11 = vsel %vm594_vm8, %v1155_v59, %v591_v7  ;;  %v756_v12 = vmul.f32 %v1157_v8, %v754_v62  ;;  %791 = vmatpush.msrb.mxu2 %v771_v10  ;;  %vm761_vm10 = vweird.f32 %v1157_v8  ;;  %v1159_v51 = vpop.eup %1158  ;;  %v876_v62 = vld [vmem:[%s1582_s7 + $0x10] sm:$0xff]  ;;  %v918_v7 = vld [vmem:[%s1584_s9 + $0x60] sm:$0xff] }
 0x2ac   : > { %v600_v13 = vsel %vm597_vm9, %v599_v9, %v595_v11  ;;  %vm762_vm13 = vmor %vm760_vm12, %vm761_vm10  ;;  %v841_v52 = vmul.f32 32.0, %v1159_v51  ;;  %vm845_vm6 = vweird.f32 %v1159_v51  ;;  %928 = vmatpush.msra.mxu0 %v919_v3  ;;  %v917_v9 = vld [vmem:[%s1584_s9 + $0x58] sm:$0xff]  ;;  %v916_v10 = vld [vmem:[%s1584_s9 + $0x50] sm:$0xff] }
 0x2ad   : > { %v757_v15 = vsub.f32 1.0, %v756_v12  ;;  %v601_v16 = vmul.f32 %v1410_v39, %v600_v13  ;;  %v805_v39 = vld [vmem:[%s1578_s3 + $0x10] sm:$0xff]  ;;  %v915_v11 = vld [vmem:[%s1584_s9 + $0x48] sm:$0xff]  ;;  %v914_v12 = vld [vmem:[%s1584_s9 + $0x40] sm:$0xff] }
 0x2ae   : > { %827 = vmatpush.msrb.mxu1 %v805_v39  ;;  %v842_v53 = vsub.f32 1.0, %v841_v52  ;;  %929 = vmatpush.msra.mxu0 %v918_v7 }
 0x2af   : > { %v758_v18 = vmul.f32 %v1157_v8, %v757_v15  ;;  %1067 = vmatmul.msk.f32.vlgmr.msra.gmra.mxu2 %vm473_vm1, %v601_v16  ;;  %v912_v16 = vld [vmem:[%s1584_s9 + $0x30] sm:$0xff] }
 0x2b0   : > { %828 = vmatpush.msrb.mxu1 %v804_v40  ;;  %v843_v54 = vmul.f32 %v1159_v51, %v842_v53  ;;  %930 = vmatpush.msra.mxu0 %v917_v9 }
 0x2b1   : > { %v759_v21 = vadd.f32 %v1157_v8, %v758_v18  ;;  %v911_v18 = vld [vmem:[%s1584_s9 + $0x28] sm:$0xff] }
 0x2b2   : > { %829 = vmatpush.msrb.mxu1 %v803_v41  ;;  %v844_v55 = vadd.f32 %v1159_v51, %v843_v54  ;;  %931 = vmatpush.msra.mxu0 %v916_v10 }
 0x2b3   : > { %v763_v25 = vsel %vm762_vm13, %v1157_v8, %v759_v21 }
 0x2b4   : > { %v768_v26 = vsel %vm765_vm15, %v767_v23, %v763_v25  ;;  %v1454_v56 = vsel %vm845_vm6, %v1159_v51, %v844_v55  ;;  %932 = vmatpush.msra.mxu0 %v915_v11 }
 0x2b5   : > { %v769_v27 = vmul.f32 %v1414_v42, %v768_v26 }
 0x2b6   : > { %933 = vmatpush.msra.mxu0 %v914_v12 }
 0x2b7   : > { %1073 = vmatmul.msk.f32.vlgmr.msrb.gmra.mxu2 %vm473_vm1, %v769_v27  ;;  %v1137_v27 = vld [vmem:[%s1581_s6] ss:$0 sm:$0xff] }
 0x2b8   : > { %934 = vmatpush.msra.mxu0 %v913_v14 }
 0x2ba   : > { %935 = vmatpush.msra.mxu0 %v912_v16 }
 0x2bb   : > { %v687_v31 = vpop.permute.xlu1 %686 }
 0x2bc   : > { %707 = vmatpush.msrb.mxu3 %v687_v31  ;;  %936 = vmatpush.msra.mxu0 %v911_v18  ;;  %v907_v31 = vld [vmem:[%s1584_s9 + $0x8] sm:$0xff] }
 0x2bd   : > { %1070 = vmatmul.msk.f32.vlgmr.msrb.gmra.mxu3 %vm473_vm1, %v685_v32  ;;  %v906_v32 = vld [vmem:[%s1584_s9] sm:$0xff] }
 0x2be   : > { %897 = vmatpush.msra.mxu3 %v877_v61  ;;  %937 = vmatpush.msra.mxu0 %v910_v20 }
 0x2c0   : > { %898 = vmatpush.msra.mxu3 %v876_v62  ;;  %938 = vmatpush.msra.mxu0 %v909_v22 }
 0x2c2   : > { %899 = vmatpush.msra.mxu3 %v875_v63  ;;  %939 = vmatpush.msra.mxu0 %v908_v30 }
 0x2c4   : > { %900 = vmatpush.msra.mxu3 %v874_v0  ;;  %940 = vmatpush.msra.mxu0 %v907_v31 }
 0x2c6   : > { %941 = vmatpush.msra.mxu0 %v906_v32 }
 0x328   : > { %v546_v33 = vpop.f32.mrf.mxu2 }
 0x329   : > { %549 = vst.msk [vmem:[#allocation2] sm:$0xff] %vm473_vm1, %v546_v33  ;;  %vm716_vm1 = vcmask 195712   ;;  %v1138_v33 = vld [vmem:[%s1583_s8] ss:$0 sm:$0xff] }
 0x332   : > { %v625_v34 = vpop.f32.mrf.mxu2 }
 0x333   : > { %629 = vrot.lane.b32.xlu2 %v625_v34, %s1239_s17 }
 0x33a   : > { %v793_v36 = vpop.f32.mrf.mxu2 }
 0x33b   : > { %797 = vrot.lane.b32.xlu0 %v793_v36, %s1240_s27 }
 0x340   : > { %v709_v37 = vpop.f32.mrf.mxu3 }
 0x341   : > { %713 = vrot.lane.b32.xlu1 %v709_v37, %s1241_s14  ;;  %s991_s14 = scalar_lea.hbm %s1588_s13, %s1077_s21 }
 0x342   : > { %s995_s0 = sshll.u32 %s991_s14, 4  ;;  %s996_s0 = int_to_ptr.hbm [resolvable:$true] %s995_s0 }
 0x343   : > { %s1178_s23 = sshra.s32 %s996_s0, 4  ;;  %s1179_s23 = int_to_ptr.hbm [resolvable:$true] %s1178_s23 }
 0x344   : > { %s1180_s21 = scalar_lea.hbm %s1179_s23, 8  ;;  %p1185_p0 = scmp.lt.s32.totalorder %s1179_s23, %s1588_s13 }
 0x345   : > { %p1181_p11 = scmp.ne.s32.totalorder %s1179_s23, %s1180_s21  ;;  %p1186_p1 = scmp.lt.s32.totalorder %s1184_s20, %s1180_s21 }
 0x347   : > { %p1182_p12 = pnand %p1181_p11, %p1351_p5  ;;  %p1187_p2 = por %p1186_p1, %p1185_p0 }
 0x349   : > { %p1183_p13 = pneg %p1182_p12 }
 0x34b   : > { %p1188_p3 = pnand %p1187_p2, %p1183_p13 }
 0x38d   : > { %v630_v38 = vpop.permute.xlu2 %629 }
 0x38e   : > { %633 = vst.msk [vmem:[#allocation2] sm:$0xff] %vm632_vm4, %v630_v38  ;;  %v1139_v38 = vld [vmem:[%s1585_s10] ss:$0 sm:$0xff] }
 0x3ad   : > { %v798_v43 = vpop.permute.xlu0 %797 }
 0x3b3   : > { %v714_v42 = vpop.permute.xlu1 %713 }
 0x3b4   : > { %717 = vst.msk [vmem:[#allocation2] sm:$0xff] %vm716_vm1, %v714_v42 }
 0x3b5   : > { %801 = vst.msk [vmem:[#allocation2] sm:$0xff] %vm800_vm5, %v798_v43 }
 0x3bc   : > { %v802_v44 = vld [vmem:[#allocation2] sm:$0xff] }
 0x3bd   : > { %1074 = vmatmul.msk.f32.vlgmr.msrb.gmra.mxu1 %vm445_vm0, %v802_v44 }
 0x43a   : > { %v831_v46 = vpop.f32.mrf.mxu1 }
 0x43b   : > { %v832_v47 = vadd.f32 %v1135_v45, %v831_v46 }
 0x43d   : > { %v834_v48 = vadd.f32 %v832_v47, %v1378_v4 }
 0x43f   : > { %v837_v49 = vsel %vm445_vm0, %v834_v48, 0.0 }
 0x440   : > { %838 = vadd.xlane.f32.xlu2 %v837_v49 }
 0x4b3   : > { %v839_v57 = vpop.xlane.xlu2 %838 }
 0x4b4   : > { %v847_v58 = vmul.f32 %v1454_v56, %v839_v57  ;;  %v1140_v57 = vld [vmem:[%s1586_s11] ss:$0 sm:$0xff] }
 0x4b6   : > { %v848_v59 = vsub.f32 %v834_v48, %v847_v58 }
 0x4b8   : > { %v849_v60 = vmul.f32 %v848_v59, %v848_v59 }
 0x4ba   : > { %v850_v4 = vsel %vm445_vm0, %v849_v60, 0.0 }
 0x4bb   : > { %851 = vadd.xlane.f32.xlu1 %v850_v4 }
 0x52e   : > { %v852_v5 = vpop.xlane.xlu1 %851 }
 0x52f   : > { %v853_v6 = vmul.f32 %v852_v5, %v1454_v56 }
 0x531   : > { %v854_v8 = vadd.f32 1e-05, %v853_v6 }
 0x533   : > { %1160 = vrsqrt.f32 %v854_v8  ;;  %vm861_vm8 = vweird.f32 %v854_v8 }
 0x539   : > { %v1161_v13 = vpop.eup %1160 }
 0x53a   : > { %v856_v15 = vmul.f32 %v1161_v13, %v854_v8  ;;  %vm862_vm7 = vweird.f32 %v1161_v13 }
 0x53b   : > { %vm863_vm9 = vmor %vm861_vm8, %vm862_vm7 }
 0x53c   : > { %v857_v17 = vmul.f32 %v1161_v13, %v856_v15 }
 0x53e   : > { %v858_v19 = vmul.f32 0.5, %v857_v17 }
 0x540   : > { %v859_v21 = vsub.f32 1.5, %v858_v19 }
 0x542   : > { %v860_v23 = vmul.f32 %v1161_v13, %v859_v21 }
 0x544   : > { %v864_v25 = vsel %vm863_vm9, %v1161_v13, %v860_v23 }
 0x545   : > { %v865_v26 = vmul.f32 %v864_v25, %v848_v59  ;;  %v1141_v59 = vld [vmem:[%s1587_s12] ss:$0 sm:$0xff] }
 0x547   : > { %v869_v28 = vmul.f32 %v1136_v24, %v865_v26 }
 0x549   : > { %v873_v29 = vadd.f32 %v1137_v27, %v869_v28 }
 0x54b   : > { %1075 = vmatmul.msk.f32.vlgmr.msra.gmra.mxu3 %vm445_vm0, %v873_v29 }
 0x5ce   : > { %v902_v34 = vpop.f32.mrf.mxu3 }
 0x5cf   : > { %v903_v36 = vadd.f32 %v1138_v33, %v902_v34 }
 0x5d1   : > { %v905_v37 = vmax.f32 %v903_v36, 0.0 }
 0x5d3   : > { %942 = vmatmul.f32.vlgmr.msra.gmra.mxu0 %v905_v37 }
 0x650   : > { %v943_v35 = vpop.f32.mrf.mxu0 }
 0x651   : > { %v944_v39 = vadd.f32 %v1139_v38, %v943_v35 }
 0x653   : > { %v946_v40 = vadd.f32 %v944_v39, %v873_v29 }
 0x655   : > { %v949_v41 = vsel %vm445_vm0, %v946_v40, 0.0 }
 0x656   : > { %950 = vadd.xlane.f32.xlu0 %v949_v41 }
 0x6c9   : > { %v951_v42 = vpop.xlane.xlu0 %950 }
 0x6ca   : > { %v952_v43 = vmul.f32 %v951_v42, %v1454_v56 }
 0x6cc   : > { %v953_v44 = vsub.f32 %v946_v40, %v952_v43 }
 0x6ce   : > { %v954_v45 = vmul.f32 %v953_v44, %v953_v44 }
 0x6d0   : > { %v955_v46 = vsel %vm445_vm0, %v954_v45, 0.0 }
 0x6d1   : > { %956 = vadd.xlane.f32.xlu2 %v955_v46 }
 0x744   : > { %v957_v47 = vpop.xlane.xlu2 %956 }
 0x745   : > { %v958_v48 = vmul.f32 %v957_v47, %v1454_v56 }
 0x747   : > { %v959_v49 = vadd.f32 1e-05, %v958_v48 }
 0x749   : > { %1162 = vrsqrt.f32 %v959_v49  ;;  %vm966_vm11 = vweird.f32 %v959_v49 }
 0x74f   : > { %v1163_v50 = vpop.eup %1162 }
 0x750   : > { %v961_v51 = vmul.f32 %v1163_v50, %v959_v49  ;;  %vm967_vm10 = vweird.f32 %v1163_v50 }
 0x751   : > { %vm968_vm12 = vmor %vm966_vm11, %vm967_vm10 }
 0x752   : > { %v962_v52 = vmul.f32 %v1163_v50, %v961_v51 }
 0x754   : > { %v963_v53 = vmul.f32 0.5, %v962_v52 }
 0x756   : > { %v964_v54 = vsub.f32 1.5, %v963_v53 }
 0x758   : > { %v965_v55 = vmul.f32 %v1163_v50, %v964_v54 }
 0x75a   : > { %v969_v56 = vsel %vm968_vm12, %v1163_v50, %v965_v55 }
 0x75b   : > { %v970_v58 = vmul.f32 %v969_v56, %v953_v44 }
 0x75d   : > { %v974_v60 = vmul.f32 %v1140_v57, %v970_v58 }
 0x75f   : > { %v978_v4 = vadd.f32 %v1141_v59, %v974_v60 }
 0x761   : > { %979 = vst.msk [vmem:[%s431_s15] sm:$0xff] %vm445_vm0, %v978_v4 }
 0x762   : > { %1191 = shalt.err (!%p1188_p3)
}
 0x763   : > { %1080 = dma.vmem_to_hbm [thread:$0]  (%p1351_p5), %s994_s29, 128, %s996_s0, %s981_s22  }
 0x764 PF: > { %p1086_p4 = scmp.ge.s32.totalorder %s1226_s28, 2  ;;  %s1007_s16 = sand.u32 1, %s1214_s25  }
 0x765   : > { %s1008_s30 = scalar_lea.sflag [#allocation4], %s1007_s16 }
 0x766   : > { %p1083_p7 = pnand %p1086_p4, %p1355_p6 }
 0x768   : > { %p1084_p8 = pneg %p1083_p7 }
 0x76a   : > { %1209 = dma.done.wait (%p1084_p8), %s1008_s30, 128  }
 0x76b   : > { %1211 = vsyncadd (%p1084_p8), %s1008_s30, 4294967168  ;;  %s1599_s28 = sld [smem:[#allocation7_spill]]  ;;  %s1602_s25 = smov %s1218_s26 }
 0x76c   : > { %s1600_s15 = sld [smem:[#allocation6_spill]] }
 0x76d   : > { %s1601_s27 = sld [smem:[#allocation8_spill]] }
 0x771   : > { %p23_p9 = scmp.ge.s32.totalorder %s1599_s28, 4  }
 0x772   : > { %s1603_s26 = smov %s1600_s15 }
 0x773   :  { %25 = sbr.rel (!%p23_p9) target bundleno = 5 (0x5), region = 107 }
 0x778   :  { %1014 = vsyncpa [#allocation4], 1 }
 0x779   :  { %1016 = vsyncpa [#allocation4 + $0x1], 1 }

</bundles_post_ra>
